<compile_context>
chip_gen: v7x
topology: tpu7x:2x2x1
jax: 0.10.0
libtpu: 0.0.40
codegen_flags: <defaults>
</compile_context>

<pallas_src>
import functools

import jax
import jax.numpy as jnp
from jax.experimental import pallas as pl
from jax.experimental.pallas import tpu as pltpu


LANE = 128          # TPU lane width: hidden/output feature dims padded to this
SUBLANE_BF16 = 16   # bf16 tile is (16, 128): keep packed sections 16-row aligned


def _round_up(x, m):
    return (x + m - 1) // m * m


def pack_params(w1, b1, w2, b2, dtype=jnp.bfloat16):
    """One-time packing of PyTorch-layout params into a single lane-dense array.

    Layout of the returned [L1 + 128, 128] array (L1 = round_up(IN+1, 16)):
      rows 0..IN-1          : W1^T, zero-padded to 128 hidden lanes
      row  IN               : b1 in lanes 0..H-1, and 1.0 at lane H ("ones lane")
      rows L1 .. L1+H-1     : W2^T, zero-padded to 128 output lanes
      row  L1+H             : b2 (picked up by the ones lane of the hidden acts)
    """
    H, IN = w1.shape
    O, H2 = w2.shape
    assert H2 == H
    assert H + 1 <= LANE and O <= LANE, "packing scheme assumes hidden+1 and output <= 128"
    L1 = _round_up(IN + 1, SUBLANE_BF16)

    p = jnp.zeros((L1 + LANE, LANE), jnp.float32)
    # layer 1: transposed weights + bias row (+ the ones lane for layer-2 bias)
    p = p.at[0:IN, 0:H].set(jnp.transpose(w1))
    p = p.at[IN, 0:H].set(b1)
    p = p.at[IN, H].set(1.0)
    # layer 2: transposed weights with bias folded in as row H
    p = p.at[L1:L1 + H, 0:O].set(jnp.transpose(w2))
    p = p.at[L1 + H, 0:O].set(b2)
    return p.astype(dtype)


def linear_qnet_forward(x, packed, *, output_size, block_b=512):
    """x: [B, IN] float32; packed: output of pack_params(). Returns [B, output_size]."""
    B, IN = x.shape
    L1 = _round_up(IN + 1, SUBLANE_BF16)
    rows, cols = packed.shape
    HP = rows - L1                      # padded hidden width (=128)
    TB = min(block_b, B)                # batch tile (>=512 rows once B is large)

    def kernel(x_ref, p_ref, o_ref):
        x_bf = x_ref[...].astype(jnp.bfloat16)                 # [TB, IN]
        w1 = p_ref[0:IN, :]                                    # [IN, 128]  bf16
        b1 = p_ref[IN:IN + 1, :].astype(jnp.float32)           # [1, 128]
        w2 = p_ref[L1:L1 + HP, :]                              # [128, 128] bf16
        h = jnp.dot(x_bf, w1, preferred_element_type=jnp.float32) + b1
        h = jnp.maximum(h, 0.0)         # ReLU; lane H stays 1.0 -> carries b2
        o = jnp.dot(h.astype(jnp.bfloat16), w2,
                    preferred_element_type=jnp.float32)
        o_ref[...] = o.astype(o_ref.dtype)                     # lane-dense store

    out_padded = pl.pallas_call(
        kernel,
        out_shape=jax.ShapeDtypeStruct((B, cols), x.dtype),
        grid=(pl.cdiv(B, TB),),
        in_specs=[
            pl.BlockSpec((TB, IN), lambda i: (i, 0)),      # x streams over batch
            pl.BlockSpec((rows, cols), lambda i: (0, 0)),  # params stay resident
        ],
        out_specs=pl.BlockSpec((TB, cols), lambda i: (i, 0)),
        compiler_params=pltpu.CompilerParams(
            dimension_semantics=("parallel",),  # batch tiles split across TCs (v7x)
        ),
    )(x, packed)
    return out_padded[:, :output_size]


def init_params(key, input_size, hidden_size, output_size):
    """Deterministic init mimicking nn.Linear's U(-1/sqrt(fan_in), 1/sqrt(fan_in))."""
    k1, k2, k3, k4 = jax.random.split(key, 4)
    bound1 = 1.0 / jnp.sqrt(jnp.float32(input_size))
    bound2 = 1.0 / jnp.sqrt(jnp.float32(hidden_size))
    w1 = jax.random.uniform(k1, (hidden_size, input_size), jnp.float32, -bound1, bound1)
    b1 = jax.random.uniform(k2, (hidden_size,), jnp.float32, -bound1, bound1)
    w2 = jax.random.uniform(k3, (output_size, hidden_size), jnp.float32, -bound2, bound2)
    b2 = jax.random.uniform(k4, (output_size,), jnp.float32, -bound2, bound2)
    return w1, b1, w2, b2


if __name__ == "__main__":
    # Snake-game Q-network shapes: 11 -> 32 -> 3.
    input_size, hidden_size, output_size = 11, 32, 3
    batch = 8   # NOTE: at B~1-8 the call is launch-bound; batch states per call when possible.

    key = jax.random.PRNGKey(0)
    kx, kp = jax.random.split(key)
    x = jax.random.normal(kx, (batch, input_size), jnp.float32)
    w1, b1, w2, b2 = init_params(kp, input_size, hidden_size, output_size)

    packed = pack_params(w1, b1, w2, b2)   # done ONCE, off the hot path

    fwd = jax.jit(functools.partial(linear_qnet_forward, output_size=output_size))
    out = jax.block_until_ready(fwd(x, packed))

    # bf16-quantized reference (same math the kernel performs).
    q = lambda a: a.astype(jnp.bfloat16).astype(jnp.float32)
    h_ref = jnp.maximum(q(x) @ q(w1).T + q(b1), 0.0)
    ref_q = q(h_ref) @ q(w2).T + q(b2)
    # Full-precision reference (original PyTorch forward semantics).
    ref_f32 = jnp.maximum(x @ w1.T + b1, 0.0) @ w2.T + b2

    assert out.shape == (batch, output_size)
    assert jnp.allclose(out, ref_q, atol=1e-3, rtol=1e-3)
    assert jnp.allclose(out, ref_f32, atol=5e-2, rtol=5e-2)

    # TODO(synk): save()/load() (torch.save / torch.load of the state dict) are
    # host-side file I/O with no Pallas equivalent; persist `packed` (or the raw
    # params) with numpy/orbax instead.

    print("KERNEL_OK")
</pallas_src>

<mosaic_0001>
module attributes {stable_mosaic.version = 11 : i64} {
  func.func @kernel(%arg0: i32, %arg1: memref<8x11xf32, #tpu.memory_space<vmem>>, %arg2: memref<144x128xbf16, #tpu.memory_space<vmem>>, %arg3: memref<8x128xf32, #tpu.memory_space<vmem>>) attributes {dimension_semantics = [#tpu.dimension_semantics<parallel>], iteration_bounds = array<i64: 1>, scalar_prefetch = 0 : i64, scratch_operands = 0 : i64, tpu.core_type = #tpu.core_type<tc>, window_params = [{transform_indices = @transform_0, window_bounds = array<i64: 8, 11>}, {pipeline_mode = #tpu.pipeline_mode<synchronous>, transform_indices = @transform_1, window_bounds = array<i64: 144, 128>}, {transform_indices = @transform_2, window_bounds = array<i64: 8, 128>}]} {
    %c0 = arith.constant 0 : index
    %c0_0 = arith.constant 0 : index
    %0 = vector.load %arg1[%c0, %c0_0] : memref<8x11xf32, #tpu.memory_space<vmem>>, vector<8x11xf32>
    %1 = arith.truncf %0 : vector<8x11xf32> to vector<8x11xbf16>
    %c0_1 = arith.constant 0 : index
    %c0_2 = arith.constant 0 : index
    %2 = vector.load %arg2[%c0_1, %c0_2] : memref<144x128xbf16, #tpu.memory_space<vmem>>, vector<11x128xbf16>
    %c11 = arith.constant 11 : index
    %c0_3 = arith.constant 0 : index
    %3 = vector.load %arg2[%c11, %c0_3] : memref<144x128xbf16, #tpu.memory_space<vmem>>, vector<1x128xbf16>
    %4 = arith.extf %3 : vector<1x128xbf16> to vector<1x128xf32>
    %c16 = arith.constant 16 : index
    %c0_4 = arith.constant 0 : index
    %5 = vector.load %arg2[%c16, %c0_4] : memref<144x128xbf16, #tpu.memory_space<vmem>>, vector<128x128xbf16>
    %cst = arith.constant dense<0.000000e+00> : vector<8x128xf32>
    %6 = tpu.matmul %1, %2, %cst {dimension_numbers = #tpu.dot_dimension_numbers<[1], [0], [0], [1], [0, 0, 1, 1], [], []>} : vector<8x11xbf16>, vector<11x128xbf16>, vector<8x128xf32> -> vector<8x128xf32>
    %7 = vector.broadcast %4 : vector<1x128xf32> to vector<8x128xf32>
    %8 = arith.addf %6, %7 : vector<8x128xf32>
    %cst_5 = arith.constant 0.000000e+00 : f32
    %9 = vector.broadcast %cst_5 : f32 to vector<8x128xf32>
    %10 = arith.maximumf %8, %9 : vector<8x128xf32>
    %11 = arith.truncf %10 : vector<8x128xf32> to vector<8x128xbf16>
    %cst_6 = arith.constant dense<0.000000e+00> : vector<8x128xf32>
    %12 = tpu.matmul %11, %5, %cst_6 {dimension_numbers = #tpu.dot_dimension_numbers<[1], [0], [0], [1], [0, 0, 1, 1], [], []>} : vector<8x128xbf16>, vector<128x128xbf16>, vector<8x128xf32> -> vector<8x128xf32>
    %c0_7 = arith.constant 0 : index
    %c0_8 = arith.constant 0 : index
    %13 = vector.load %arg3[%c0_7, %c0_8] : memref<8x128xf32, #tpu.memory_space<vmem>>, vector<8x128xf32>
    tpu.vector_store %arg3[%c0_7, %c0_8], %12 {strides = array<i32>} : memref<8x128xf32, #tpu.memory_space<vmem>>, vector<8x128xf32>,
    return
  }
  func.func @transform_0(%arg0: i32) -> (i32, i32) {
    %c0_i32 = arith.constant 0 : i32
    %c0_i32_0 = arith.constant 0 : i32
    return %arg0, %c0_i32 : i32, i32
  }
  func.func @transform_1(%arg0: i32) -> (i32, i32) {
    %c0_i32 = arith.constant 0 : i32
    %c0_i32_0 = arith.constant 0 : i32
    %c0_i32_1 = arith.constant 0 : i32
    return %c0_i32, %c0_i32_0 : i32, i32
  }
  func.func @transform_2(%arg0: i32) -> (i32, i32) {
    %c0_i32 = arith.constant 0 : i32
    %c0_i32_0 = arith.constant 0 : i32
    return %arg0, %c0_i32 : i32, i32
  }
}

</mosaic_0001>

<bundles_post_ra>
// kernel: linear_qnet_forward.1
= control target key start
LH: loop header
LB: loop body
LE: loop exit
PB: predicated region body
PF: predicated region fallthrough
CT: control target
= control target key end

     0   :  { %7 = vsyncpa [#allocation3], 0  ;;  %s384_s0 = inlined_call_operand.hbm [shape: f32[8,11], index: 0, kind: input, shape index: {}]   ;;  %s385_s1 = inlined_call_operand.hbm [shape: bf16[144,128], index: 1, kind: input, shape index: {}]   ;;  %s386_s2 = inlined_call_operand.vmem [shape: f32[8,128], index: 2, kind: output, shape index: {}]  }
   0x1   :  { %8 = vsyncpa [#allocation5], 0  ;;  %s328_s9 = smov [#allocation2]   ;;  %s329_s11 = smov [#allocation4]  }
   0x2   :  { %s15_s10 = sshll.u32 %s328_s9, 4  ;;  %s24_s12 = sshll.u32 %s329_s11, 4  ;;  %s16_s10 = int_to_ptr.vmem [resolvable:$true] %s15_s10  ;;  %s350_s12 = int_to_ptr.vmem [resolvable:$true] %s24_s12 }
   0x3   :  { %s280_s15 = scalar_lea.hbm %s384_s0, 128 }
   0x4   :  { %p281_p0 = scmp.ne.s32.totalorder %s384_s0, %s280_s15  ;;  %p284_p1 = scmp.lt.u32.totalorder %s280_s15, %s384_s0 }
   0x6   :  { %p286_p2 = pnand %p284_p1, %p281_p0 }
   0x8   :  { %289 = shalt.err (!%p286_p2)
}
   0x9   :  { %s290_s20 = scalar_lea.vmem %s16_s10, 128  ;;  %p295_p4 = scmp.lt.s32.totalorder %s16_s10, %s16_s10 }
   0xa   :  { %p291_p3 = scmp.ne.s32.totalorder %s16_s10, %s290_s20  ;;  %p296_p5 = scmp.lt.s32.totalorder %s290_s20, %s290_s20 }
   0xc   :  { %p297_p6 = por %p296_p5, %p295_p4 }
   0xe   :  { %p298_p7 = pnand %p297_p6, %p291_p3 }
  0x10   :  { %301 = shalt.err (!%p298_p7)
}
  0x11   :  { %18 = dma.hbm_to_vmem [thread:$0]  %s384_s0, 128, %s16_s10, [#allocation3]  }
  0x12   :  { %s302_s25 = scalar_lea.hbm %s385_s1, 1152 }
  0x13   :  { %p303_p8 = scmp.ne.s32.totalorder %s385_s1, %s302_s25  ;;  %p306_p9 = scmp.lt.u32.totalorder %s302_s25, %s385_s1 }
  0x15   :  { %p308_p10 = pnand %p306_p9, %p303_p8 }
  0x17   :  { %311 = shalt.err (!%p308_p10)
}
  0x18   :  { %s312_s30 = scalar_lea.vmem %s350_s12, 1152  ;;  %p317_p12 = scmp.lt.s32.totalorder %s350_s12, %s350_s12 }
  0x19   :  { %p313_p11 = scmp.ne.s32.totalorder %s350_s12, %s312_s30  ;;  %p318_p13 = scmp.lt.s32.totalorder %s312_s30, %s312_s30 }
  0x1b   :  { %p319_p0 = por %p318_p13, %p317_p12 }
  0x1d   :  { %p320_p1 = pnand %p319_p0, %p313_p11 }
  0x1f   :  { %323 = shalt.err (!%p320_p1)
}
  0x20   :  { %s330_s0 = smov 64   ;;  %s331_s3 = smov 4  }
  0x21   :  { %30 = dma.hbm_to_vmem [thread:$0]  %s385_s1, 1152, %s350_s12, [#allocation5], %s330_s0, %s330_s0, %s331_s3  }
  0x22   :  { %324 = dma.done.wait [#allocation3], 128  }
  0x23   :  { %325 = vsyncadd [#allocation3], 4294967168 }
  0x24   :  { %326 = dma.done.wait [#allocation5], 1152  }
  0x25   :  { %327 = vsyncadd [#allocation5], 4294966144  ;;  %vm73_vm0 = vcmask 1044480   ;;  %v332_v0 = vmov 0.0   ;;  %vm333_vm1 = vmmov 0   ;;  %vm74_vm2 = vcmask 1045504  }
  0x26   :  { %238 = vmatprep.subr.bf16.mxu0 %v332_v0  ;;  %244 = vmatprep.subr.bf16.mxu1 %v332_v0  ;;  %v334_v1 = vmov 65535   ;;  %v271_v4 = vld [vmem:[#allocation4] sm:$0x3f]   ;;  %v38_v5 = vld [vmem:[#allocation2] sm:$0xff]  ;;  %v272_v7 = vld [vmem:[#allocation4 + $0x8] sm:$0xff]   ;;  %vm69_vm3 = vcmask 89088   ;;  %v60_v16 = vlaneseq }
  0x27   :  { %240 = vmatprep.mubr.msk.bf16.mxu0 %vm333_vm1, %v332_v0  ;;  %260 = vmatprep.mubr.msk.bf16.mxu1 %vm333_vm1, %v332_v0  ;;  %v75_v2 = vsel %vm73_vm0, 4294967295, %v334_v1  ;;  %v39_v8 = vpack.c.bf16 %v38_v5, %v38_v5  ;;  %v273_v9 = vld [vmem:[#allocation4 + $0x10] sm:$0xff]   ;;  %v274_v10 = vld [vmem:[#allocation4 + $0x18] sm:$0xff]   ;;  %v275_v11 = vld [vmem:[#allocation4 + $0x20] sm:$0xff]  }
  0x28   :  { %v76_v3 = vsel %vm74_vm2, %v75_v2, 0  ;;  %245 = vmatpush3.bf16.msra.mxu1 %v272_v7  ;;  %v276_v12 = vld [vmem:[#allocation4 + $0x28] sm:$0xff]   ;;  %v277_v13 = vld [vmem:[#allocation4 + $0x30] sm:$0xff]   ;;  %v278_v14 = vld [vmem:[#allocation4 + $0x38] sm:$0xff]   ;;  %v61_v17 = vshrl.u32 %v60_v16, 7 }
  0x29   :  { %v78_v6 = vand.u32 %v271_v4, %v76_v3  ;;  %246 = vmatprep.subr.bf16.mxu1 %v332_v0  ;;  %v279_v15 = vld [vmem:[#allocation4 + $0x40] sm:$0xff]  }
  0x2a   :  { %v42_v18 = vld [vmem:[#allocation4 + $0x4] sm:$0x2]  ;;  %v62_v20 = vsub.s32 3, %v61_v17 }
  0x2b   :  { %239 = vmatpush3.bf16.msra.mxu0 %v78_v6  ;;  %v43_v19 = vunpack.c.l.bf16 %v42_v18 }
  0x2c   :  { %247 = vmatpush3.bf16.msra.mxu1 %v273_v9 }
  0x2d   :  { %248 = vmatprep.subr.bf16.mxu1 %v332_v0  ;;  %v63_v21 = vrot.slane %v43_v19, %v62_v20 }
  0x2e   :  { %241 = vmatmul.mubr.msk.bf16.vlgmr.msra.gmra.mrb[0].mxu0 %vm69_vm3, %v39_v8 }
  0x30   :  { %249 = vmatpush3.bf16.msra.mxu1 %v274_v10 }
  0x31   :  { %250 = vmatprep.subr.bf16.mxu1 %v332_v0 }
  0x34   :  { %251 = vmatpush3.bf16.msra.mxu1 %v275_v11 }
  0x35   :  { %252 = vmatprep.subr.bf16.mxu1 %v332_v0 }
  0x38   :  { %253 = vmatpush3.bf16.msra.mxu1 %v276_v12 }
  0x39   :  { %254 = vmatprep.subr.bf16.mxu1 %v332_v0 }
  0x3c   :  { %255 = vmatpush3.bf16.msra.mxu1 %v277_v13 }
  0x3d   :  { %256 = vmatprep.subr.bf16.mxu1 %v332_v0 }
  0x40   :  { %257 = vmatpush3.bf16.msra.mxu1 %v278_v14 }
  0x41   :  { %258 = vmatprep.subr.bf16.mxu1 %v332_v0 }
  0x44   :  { %259 = vmatpush3.bf16.msra.mxu1 %v279_v15 }
 0x101   :  { %v114_v22 = vpop.f32.mrb[0].mxu0 }
 0x102   :  { %v115_v23 = vadd.f32 %v114_v22, %v63_v21  ;;  %v242_v24 = vpop.f32.mrb[1].mxu0 }
 0x103   :  { %v117_v25 = vpop.f32.mrb[2].mxu0 }
 0x104   :  { %v120_v26 = vmax.f32 %v115_v23, 0.0  ;;  %v243_v27 = vpop.f32.mrb[3].mxu0 }
 0x106   :  { %v121_v28 = vpack.c.bf16 %v120_v26, %v120_v26 }
 0x108   :  { %261 = vmatmul.mubr.bf16.vlgmr.msra.gmra.mrb[0].mxu1 %v121_v28 }
 0x1db   :  { %v204_v29 = vpop.f32.mrb[0].mxu1 }
 0x1dc   :  { %210 = vst [vmem:[%s386_s2] sm:$0xff] %v204_v29  ;;  %v262_v30 = vpop.f32.mrb[1].mxu1 }
 0x1dd   :  { %v207_v31 = vpop.f32.mrb[2].mxu1 }
 0x1de   :  { %v263_v32 = vpop.f32.mrb[3].mxu1 }
 0x1df   :  { %215 = vsyncpa [#allocation3], 1 }
 0x1e0   :  { %216 = vsyncpa [#allocation5], 1 }

</bundles_post_ra>
